<compile_context>
chip_gen: v7x
topology: tpu7x:2x2x1
jax: 0.10.0
libtpu: 0.0.40
codegen_flags: <defaults>
</compile_context>

<pallas_src>
import math

import jax
import jax.numpy as jnp
from jax.experimental import pallas as pl
from jax.experimental.pallas import tpu as pltpu

EPS = 1e-5  # PyTorch BatchNorm2d default eps


def _round_up(x, m):
    return (x + m - 1) // m * m


# ----------------------------- Pallas kernels ------------------------------

def _conv1x1_stats_kernel(x_ref, wt_ref, stats_ref):
    """Stats-only pass: y = W^T @ x_tile (f32 MXU), emit per-channel sum / sumsq."""
    # x_ref: (1, Cin, t_hw), wt_ref: (Cp, Cin) -> y: (Cp, t_hw)
    y = jnp.dot(wt_ref[...], x_ref[0], preferred_element_type=jnp.float32)
    stats_ref[0, :, 0:1] = jnp.sum(y, axis=1, keepdims=True)        # (Cp, 1)
    stats_ref[0, :, 1:2] = jnp.sum(y * y, axis=1, keepdims=True)    # (Cp, 1)


def _conv1x1_bn_relu_kernel(x_ref, wt_ref, bn_ref, o_ref):
    """Fused pass: recompute y = W^T @ x_tile, apply folded BN (scale/shift) + ReLU."""
    y = jnp.dot(wt_ref[...], x_ref[0], preferred_element_type=jnp.float32)
    scale = bn_ref[:, 0:1]   # (Cp, 1) broadcast along lanes
    shift = bn_ref[:, 1:2]
    o_ref[0] = jnp.maximum(y * scale + shift, 0.0).astype(o_ref.dtype)


# ----------------------------- module forward -------------------------------

def conv2d_relu(x_nchw, w, gamma, beta, *, t_hw=512):
    """Conv2d(kernel_size=1, stride=1, padding=0, bias=False) + BatchNorm2d + ReLU.

    x_nchw : (N, Cin, H, W) float32
    w      : (Cin, Cout) float32  (1x1 conv weight, flattened over the 1x1 window)
    gamma  : (Cout,) float32      (BN weight)
    beta   : (Cout,) float32      (BN bias)
    Returns (N, Cout, H, W) float32.  BatchNorm uses training-mode batch statistics.
    """
    N, Cin, H, W = x_nchw.shape
    Cout = w.shape[1]
    HW = H * W
    count = N * HW  # true element count per channel (padding excluded)

    Cp = _round_up(Cout, 8)  # f32 sublane pack for the output channel axis

    # HW tile: multiple of 128 (lane dim); capped so double-buffered f32 x + out tiles
    # fit comfortably under v7x's 32 MiB scoped-VMEM default (and trivially on v5e/v6e).
    vmem_budget = 16 * 1024 * 1024
    per_col_bytes = (Cin + Cp) * 4 * 2           # x tile + out tile, double-buffered
    t_cap = max(128, (vmem_budget // per_col_bytes) // 128 * 128)
    t_hw = max(128, min(t_hw, _round_up(HW, 128), t_cap))
    t_hw = _round_up(t_hw, 128)
    HWp = _round_up(HW, t_hw)
    n_hw = HWp // t_hw

    # NCHW -> (N, Cin, HW) is a free view; zero-pad HW only if the tile doesn't divide
    # (zero columns contribute exactly 0 to sum/sumsq; dividing by `count` stays exact).
    x3 = x_nchw.reshape(N, Cin, HW)
    if HWp != HW:
        x3 = jnp.pad(x3, ((0, 0), (0, 0), (0, HWp - HW)))

    # W^T with zero-padded output channels; tiny, stays resident in VMEM.
    # TODO(synk): for large Cin*Cp (>~4 MiB) add a "parallel" Cout-tile grid axis.
    wt = jnp.pad(jnp.transpose(w), ((0, Cp - Cout), (0, 0))).astype(jnp.float32)

    # ---- Phase 1: stats-only (per-tile per-channel sum / sum-of-squares) ----
    stats = pl.pallas_call(
        _conv1x1_stats_kernel,
        out_shape=jax.ShapeDtypeStruct((N * n_hw, Cp, 2), jnp.float32),
        grid=(N, n_hw),
        in_specs=[
            pl.BlockSpec((1, Cin, t_hw), lambda n, h: (n, 0, h)),
            pl.BlockSpec((Cp, Cin), lambda n, h: (0, 0)),
        ],
        out_specs=pl.BlockSpec((1, Cp, 2), lambda n, h: (n * n_hw + h, 0, 0)),
        compiler_params=pltpu.CompilerParams(
            dimension_semantics=("parallel", "parallel")),
    )(x3, wt)

    # ---- Cross-tile BN reduction + fold into per-channel scale/shift (tiny XLA) ----
    tot = jnp.sum(stats, axis=0)                        # (Cp, 2)
    mean = tot[:, 0] / count
    # TODO(synk): E[y^2]-mean^2 in f32 can cancel when |mean|>>std; acceptable here.
    var = jnp.maximum(tot[:, 1] / count - mean * mean, 0.0)   # biased (train-mode)
    inv = jax.lax.rsqrt(var + EPS)
    gamma_p = jnp.pad(gamma, (0, Cp - Cout))            # padded channels -> scale=0
    beta_p = jnp.pad(beta, (0, Cp - Cout))              # padded channels -> shift=0
    scale = gamma_p * inv
    shift = beta_p - mean * scale
    bn = jnp.stack([scale, shift], axis=1)              # (Cp, 2), one DMA stream

    # ---- Phase 2: recompute matmul fused with BN scale/shift + ReLU (NCHW output) ----
    out = pl.pallas_call(
        _conv1x1_bn_relu_kernel,
        out_shape=jax.ShapeDtypeStruct((N, Cp, HWp), jnp.float32),
        grid=(N, n_hw),
        in_specs=[
            pl.BlockSpec((1, Cin, t_hw), lambda n, h: (n, 0, h)),
            pl.BlockSpec((Cp, Cin), lambda n, h: (0, 0)),
            pl.BlockSpec((Cp, 2), lambda n, h: (0, 0)),
        ],
        out_specs=pl.BlockSpec((1, Cp, t_hw), lambda n, h: (n, 0, h)),
        compiler_params=pltpu.CompilerParams(
            dimension_semantics=("parallel", "parallel")),
    )(x3, wt, bn)

    return out[:, :Cout, :HW].reshape(N, Cout, H, W)


# ----------------------------- main ------------------------------------------

if __name__ == "__main__":
    key = jax.random.PRNGKey(0)
    N, Cin, Hh, Ww, Cout = 2, 4, 16, 16, 32
    kx, kw = jax.random.split(key)

    x = jax.random.normal(kx, (N, Cin, Hh, Ww), jnp.float32)
    w = jax.random.normal(kw, (Cin, Cout), jnp.float32) / math.sqrt(Cin)
    gamma = jnp.ones((Cout,), jnp.float32)   # BatchNorm2d default affine init
    beta = jnp.zeros((Cout,), jnp.float32)

    # t_hw=128 at this toy size (HW=256) exercises a real multi-tile grid (2x2);
    # at production sizes leave the default (512+) to approach the HBM roofline.
    fwd = jax.jit(lambda x, w, g, b: conv2d_relu(x, w, g, b, t_hw=128))
    out = jax.block_until_ready(fwd(x, w, gamma, beta))

    assert out.shape == (N, Cout, Hh, Ww), out.shape
    assert bool(jnp.all(jnp.isfinite(out)))

    # Pure-JAX f32 reference (conv1x1 -> train-mode BN -> ReLU) sanity check.
    xc = jnp.transpose(x, (0, 2, 3, 1)).reshape(-1, Cin)
    yr = xc @ w
    mu = yr.mean(axis=0)
    var = ((yr - mu) ** 2).mean(axis=0)
    ref = jnp.maximum((yr - mu) * jax.lax.rsqrt(var + EPS) * gamma + beta, 0.0)
    ref = jnp.transpose(ref.reshape(N, Hh, Ww, Cout), (0, 3, 1, 2))
    max_err = float(jnp.max(jnp.abs(out - ref)))
    assert max_err < 1e-2, max_err   # f32 throughout; only sum-order / E[y^2] rounding

    print("KERNEL_OK")
</pallas_src>

<mosaic_0001>
module attributes {stable_mosaic.version = 11 : i64} {
  func.func @_conv1x1_stats_kernel(%arg0: i32, %arg1: i32, %arg2: memref<1x4x128xf32, #tpu.memory_space<vmem>>, %arg3: memref<32x4xf32, #tpu.memory_space<vmem>>, %arg4: memref<1x32x2xf32, #tpu.memory_space<vmem>>) attributes {dimension_semantics = [#tpu.dimension_semantics<parallel>, #tpu.dimension_semantics<parallel>], iteration_bounds = array<i64: 2, 2>, scalar_prefetch = 0 : i64, scratch_operands = 0 : i64, tpu.core_type = #tpu.core_type<tc>, window_params = [{transform_indices = @transform_0, window_bounds = array<i64: 1, 4, 128>}, {pipeline_mode = #tpu.pipeline_mode<synchronous>, transform_indices = @transform_1, window_bounds = array<i64: 32, 4>}, {transform_indices = @transform_2, window_bounds = array<i64: 1, 32, 2>}]} {
    %c0 = arith.constant 0 : index
    %c0_0 = arith.constant 0 : index
    %0 = vector.load %arg3[%c0, %c0_0] : memref<32x4xf32, #tpu.memory_space<vmem>>, vector<32x4xf32>
    %c0_1 = arith.constant 0 : index
    %c0_2 = arith.constant 0 : index
    %c0_3 = arith.constant 0 : index
    %1 = vector.load %arg2[%c0_1, %c0_2, %c0_3] : memref<1x4x128xf32, #tpu.memory_space<vmem>>, vector<1x4x128xf32>
    %2 = vector.shape_cast %1 : vector<1x4x128xf32> to vector<4x128xf32>
    %cst = arith.constant dense<0.000000e+00> : vector<32x128xf32>
    %3 = tpu.matmul %0, %2, %cst {dimension_numbers = #tpu.dot_dimension_numbers<[1], [0], [0], [1], [0, 0, 1, 1], [], []>} : vector<32x4xf32>, vector<4x128xf32>, vector<32x128xf32> -> vector<32x128xf32>
    %cst_4 = arith.constant dense<0.000000e+00> : vector<32xf32>
    %4 = vector.multi_reduction <add>, %3, %cst_4 [1] : vector<32x128xf32> to vector<32xf32>
    %5 = vector.shape_cast %4 : vector<32xf32> to vector<32x1xf32>
    %c0_5 = arith.constant 0 : index
    %c0_6 = arith.constant 0 : index
    %c0_7 = arith.constant 0 : index
    %6 = vector.load %arg4[%c0_5, %c0_6, %c0_7] : memref<1x32x2xf32, #tpu.memory_space<vmem>>, vector<1x32x1xf32>
    %7 = vector.shape_cast %6 : vector<1x32x1xf32> to vector<32x1xf32>
    %8 = vector.shape_cast %5 : vector<32x1xf32> to vector<1x32x1xf32>
    tpu.vector_store %arg4[%c0_5, %c0_6, %c0_7], %8 {strides = array<i32>} : memref<1x32x2xf32, #tpu.memory_space<vmem>>, vector<1x32x1xf32>,
    %9 = arith.mulf %3, %3 : vector<32x128xf32>
    %cst_8 = arith.constant dense<0.000000e+00> : vector<32xf32>
    %10 = vector.multi_reduction <add>, %9, %cst_8 [1] : vector<32x128xf32> to vector<32xf32>
    %11 = vector.shape_cast %10 : vector<32xf32> to vector<32x1xf32>
    %c0_9 = arith.constant 0 : index
    %c0_10 = arith.constant 0 : index
    %c1 = arith.constant 1 : index
    %12 = vector.load %arg4[%c0_9, %c0_10, %c1] : memref<1x32x2xf32, #tpu.memory_space<vmem>>, vector<1x32x1xf32>
    %13 = vector.shape_cast %12 : vector<1x32x1xf32> to vector<32x1xf32>
    %14 = vector.shape_cast %11 : vector<32x1xf32> to vector<1x32x1xf32>
    tpu.vector_store %arg4[%c0_9, %c0_10, %c1], %14 {strides = array<i32>} : memref<1x32x2xf32, #tpu.memory_space<vmem>>, vector<1x32x1xf32>,
    return
  }
  func.func @transform_0(%arg0: i32, %arg1: i32) -> (i32, i32, i32) {
    %c0_i32 = arith.constant 0 : i32
    %c0_i32_0 = arith.constant 0 : i32
    return %arg0, %c0_i32, %arg1 : i32, i32, i32
  }
  func.func @transform_1(%arg0: i32, %arg1: i32) -> (i32, i32) {
    %c0_i32 = arith.constant 0 : i32
    %c0_i32_0 = arith.constant 0 : i32
    %c0_i32_1 = arith.constant 0 : i32
    return %c0_i32, %c0_i32_0 : i32, i32
  }
  func.func @transform_2(%arg0: i32, %arg1: i32) -> (i32, i32, i32) {
    %c2_i32 = arith.constant 2 : i32
    %0 = arith.muli %arg0, %c2_i32 : i32
    %1 = arith.addi %0, %arg1 : i32
    %c0_i32 = arith.constant 0 : i32
    %c0_i32_0 = arith.constant 0 : i32
    %c0_i32_1 = arith.constant 0 : i32
    return %1, %c0_i32, %c0_i32_0 : i32, i32, i32
  }
}

module attributes {stable_mosaic.version = 11 : i64} {
  func.func @_conv1x1_bn_relu_kernel(%arg0: i32, %arg1: i32, %arg2: memref<1x4x128xf32, #tpu.memory_space<vmem>>, %arg3: memref<32x4xf32, #tpu.memory_space<vmem>>, %arg4: memref<32x2xf32, #tpu.memory_space<vmem>>, %arg5: memref<1x32x128xf32, #tpu.memory_space<vmem>>) attributes {dimension_semantics = [#tpu.dimension_semantics<parallel>, #tpu.dimension_semantics<parallel>], iteration_bounds = array<i64: 2, 2>, scalar_prefetch = 0 : i64, scratch_operands = 0 : i64, tpu.core_type = #tpu.core_type<tc>, window_params = [{transform_indices = @transform_0, window_bounds = array<i64: 1, 4, 128>}, {pipeline_mode = #tpu.pipeline_mode<synchronous>, transform_indices = @transform_1, window_bounds = array<i64: 32, 4>}, {pipeline_mode = #tpu.pipeline_mode<synchronous>, transform_indices = @transform_2, window_bounds = array<i64: 32, 2>}, {transform_indices = @transform_3, window_bounds = array<i64: 1, 32, 128>}]} {
    %c0 = arith.constant 0 : index
    %c0_0 = arith.constant 0 : index
    %0 = vector.load %arg3[%c0, %c0_0] : memref<32x4xf32, #tpu.memory_space<vmem>>, vector<32x4xf32>
    %c0_1 = arith.constant 0 : index
    %c0_2 = arith.constant 0 : index
    %c0_3 = arith.constant 0 : index
    %1 = vector.load %arg2[%c0_1, %c0_2, %c0_3] : memref<1x4x128xf32, #tpu.memory_space<vmem>>, vector<1x4x128xf32>
    %2 = vector.shape_cast %1 : vector<1x4x128xf32> to vector<4x128xf32>
    %cst = arith.constant dense<0.000000e+00> : vector<32x128xf32>
    %3 = tpu.matmul %0, %2, %cst {dimension_numbers = #tpu.dot_dimension_numbers<[1], [0], [0], [1], [0, 0, 1, 1], [], []>} : vector<32x4xf32>, vector<4x128xf32>, vector<32x128xf32> -> vector<32x128xf32>
    %c0_4 = arith.constant 0 : index
    %c0_5 = arith.constant 0 : index
    %4 = vector.load %arg4[%c0_4, %c0_5] : memref<32x2xf32, #tpu.memory_space<vmem>>, vector<32x1xf32>
    %c0_6 = arith.constant 0 : index
    %c1 = arith.constant 1 : index
    %5 = vector.load %arg4[%c0_6, %c1] : memref<32x2xf32, #tpu.memory_space<vmem>>, vector<32x1xf32>
    %6 = vector.broadcast %4 : vector<32x1xf32> to vector<32x128xf32>
    %7 = arith.mulf %3, %6 : vector<32x128xf32>
    %8 = vector.broadcast %5 : vector<32x1xf32> to vector<32x128xf32>
    %9 = arith.addf %7, %8 : vector<32x128xf32>
    %cst_7 = arith.constant 0.000000e+00 : f32
    %10 = vector.broadcast %cst_7 : f32 to vector<32x128xf32>
    %11 = arith.maximumf %9, %10 : vector<32x128xf32>
    %c0_8 = arith.constant 0 : index
    %c0_9 = arith.constant 0 : index
    %c0_10 = arith.constant 0 : index
    %12 = vector.load %arg5[%c0_8, %c0_9, %c0_10] : memref<1x32x128xf32, #tpu.memory_space<vmem>>, vector<1x32x128xf32>
    %13 = vector.shape_cast %12 : vector<1x32x128xf32> to vector<32x128xf32>
    %14 = vector.shape_cast %11 : vector<32x128xf32> to vector<1x32x128xf32>
    tpu.vector_store %arg5[%c0_8, %c0_9, %c0_10], %14 {strides = array<i32>} : memref<1x32x128xf32, #tpu.memory_space<vmem>>, vector<1x32x128xf32>,
    return
  }
  func.func @transform_0(%arg0: i32, %arg1: i32) -> (i32, i32, i32) {
    %c0_i32 = arith.constant 0 : i32
    %c0_i32_0 = arith.constant 0 : i32
    return %arg0, %c0_i32, %arg1 : i32, i32, i32
  }
  func.func @transform_1(%arg0: i32, %arg1: i32) -> (i32, i32) {
    %c0_i32 = arith.constant 0 : i32
    %c0_i32_0 = arith.constant 0 : i32
    %c0_i32_1 = arith.constant 0 : i32
    return %c0_i32, %c0_i32_0 : i32, i32
  }
  func.func @transform_2(%arg0: i32, %arg1: i32) -> (i32, i32) {
    %c0_i32 = arith.constant 0 : i32
    %c0_i32_0 = arith.constant 0 : i32
    %c0_i32_1 = arith.constant 0 : i32
    return %c0_i32, %c0_i32_0 : i32, i32
  }
  func.func @transform_3(%arg0: i32, %arg1: i32) -> (i32, i32, i32) {
    %c0_i32 = arith.constant 0 : i32
    %c0_i32_0 = arith.constant 0 : i32
    return %arg0, %c0_i32, %arg1 : i32, i32, i32
  }
}

</mosaic_0001>

<bundles_post_ra>
// kernel: _lambda_.2
= control target key start
LH: loop header
LB: loop body
LE: loop exit
PB: predicated region body
PF: predicated region fallthrough
CT: control target
= control target key end

     0   :  { %s523_s9 = smov 0   ;;  %s525_s10 = smov 0   ;;  %s600_s0 = inlined_call_operand.vmem [shape: f32[2,4,256], index: 0, kind: input, shape index: {}]   ;;  %s601_s1 = inlined_call_operand.vmem [shape: f32[32,4], index: 1, kind: input, shape index: {}]   ;;  %s602_s2 = inlined_call_operand.vmem [shape: f32[4,32,2], index: 2, kind: output, shape index: {}]  }
   0x1   :  { %s527_s11 = smov 0   ;;  %s529_s12 = smov 0  }
   0x2   :  { %s531_s13 = smov 0  }
   0x3 LB: > { %s21_s14 = sadd.s32 1, %s498_s11  ;;  %s24_s15 = sadd.s32 1, %s502_s12  ;;  %s506_s13 = sphi %s531_s13, %s12_s13   ;;  %s502_s12 = sphi %s529_s12, %s606_s12   ;;  %s498_s11 = sphi %s527_s11, %s605_s11   ;;  %s494_s10 = sphi %s525_s10, %s604_s10   ;;  %s490_s9 = sphi %s523_s9, %s603_s9  }
   0x4   : > { %p22_p0 = scmp.ge.s32.totalorder %s21_s14, 2  ;;  %p399_p1 = scmp.ge.s32.totalorder %s506_s13, 1 }
   0x5   : > { %p133_p2 = scmp.lt.s32.totalorder %s506_s13, 5 }
   0x6   : > { %s608_s14 = smov (%p22_p0, %s21_s14), 0  ;;  %s610_s15 = smov (!%p22_p0, %s24_s15), %s502_s12 }
   0x7   : > { %p134_p3 = pnand %p399_p1, %p133_p2  ;;  %p26_p4 = scmp.ge.s32.totalorder %s610_s15, 2 }
   0x8   : > { %p160_p5 = scmp.lt.s32.totalorder (!%p134_p3), %s494_s10, 1  ;;  %p162_p6 = scmp.lt.s32.totalorder (!%p134_p3), %s490_s9, 1  ;;  %v177_v0 = vld [vmem:[%s601_s1] sm:$0xff] (!%p134_p3)  ;;  %vm182_vm0 = vcmask (!%p134_p3), 31744   ;;  %v179_v1 = vld [vmem:[%s601_s1 + $0x10] sm:$0xff] (!%p134_p3)  ;;  %vm195_vm1 = vcmask (!%p134_p3), 1043456  }
   0x9   : > { %s612_s15 = smov (%p26_p4, %s610_s15), 0  ;;  %137 = sbr.rel (%p134_p3) target bundleno = 392 (0x188), region = 28 }
   0xa   : > { %420 = vmatprep.mubr.msk.f32.mxu0 (!%p134_p3), %vm182_vm0, %v177_v0  ;;  %423 = vmatprep.mubr.msk.f32.mxu1 (!%p134_p3), %vm182_vm0, %v179_v1  ;;  %v178_v3 = vld [vmem:[%s601_s1 + $0x8] sm:$0xff] (!%p134_p3)  ;;  %v180_v4 = vld [vmem:[%s601_s1 + $0x18] sm:$0xff] (!%p134_p3)  ;;  %s402_s4 = sshll.u32 (!%p134_p3), %s494_s10, 1  ;;  %vm292_vm2 = vcmask (!%p134_p3), 7168   ;;  %vm309_vm3 = vcmask (!%p134_p3), 15368  }
   0xb   : > { %s169_s5 = sadd.s32 (!%p134_p3), %s490_s9, %s402_s4 }
   0xc   : > { %p170_p7 = scmp.lt.s32.totalorder (!%p134_p3), %s169_s5, 3 }
  0x10   : > { %s161_s20 = scalar_select %p160_p5, %s494_s10, 1 }
  0x11   : > { %s163_s21 = scalar_select %p162_p6, %s490_s9, 1 }
  0x12   : > { %s400_s22 = sshll.u32 %s161_s20, 1  ;;  %s614_s5 = smov (!%p170_p7, %s169_s5), 3 }
  0x13   : > { %s165_s23 = sadd.s32 %s400_s22, %s163_s21  ;;  %s412_s6 = sshll.u32 %s614_s5, 5 }
  0x14   : > { %s401_s24 = sshll.u32 %s165_s23, 2  ;;  %s174_s16 = scalar_lea.vmem %s602_s2, %s412_s6 }
  0x15   : > { %s167_s27 = scalar_lea.vmem %s600_s0, %s401_s24 }
  0x16   : > { %v181_v2 = vld [vmem:[%s167_s27] sm:$0xf] }
  0x17   : > { %418 = vmatprep.subr.msk.mxu0 %vm195_vm1, %v181_v2  ;;  %426 = vmatprep.subr.msk.mxu1 %vm195_vm1, %v181_v2 }
  0x18   : > { %419 = vmatpush3.msk.msra.mxu0 %vm195_vm1, %v181_v2  ;;  %427 = vmatpush3.msk.msra.mxu1 %vm195_vm1, %v181_v2 }
  0x19   : > { %421 = vmatmul.mubr.msk.f32.vlgmr.msra.gmra.mrb[0].mxu0 %vm182_vm0, %v178_v3  ;;  %424 = vmatmul.mubr.msk.f32.vlgmr.msra.gmra.mrb[0].mxu1 %vm182_vm0, %v180_v4 }
  0xec   : > { %v422_v5 = vpop.f32.mrb[0].mxu0  ;;  %v425_v6 = vpop.f32.mrb[0].mxu1 }
  0xed   : > { %290 = vadd.xlane.f32.xlu1 %v425_v6  ;;  %v275_v7 = vpop.f32.mrb[1].mxu1  ;;  %286 = vadd.xlane.f32.xlu0 %v422_v5  ;;  %v265_v8 = vpop.f32.mrb[1].mxu0  ;;  %v298_v10 = vmul.f32 %v422_v5, %v422_v5  ;;  %v300_v12 = vmul.f32 %v425_v6, %v425_v6 }
  0xee   : > { %v297_v9 = vmul.f32 %v265_v8, %v265_v8  ;;  %v299_v11 = vmul.f32 %v275_v7, %v275_v7 }
  0xf1   : > { %288 = vadd.xlane.f32.xlu1 %v275_v7  ;;  %284 = vadd.xlane.f32.xlu0 %v265_v8 }
  0xf5   : > { %303 = vadd.xlane.f32.xlu1 %v298_v10  ;;  %301 = vadd.xlane.f32.xlu0 %v297_v9 }
  0xf9   : > { %307 = vadd.xlane.f32.xlu1 %v300_v12  ;;  %305 = vadd.xlane.f32.xlu0 %v299_v11 }
 0x17a   : > { %v291_v13 = vpop.xlane.xlu1 %290  ;;  %v287_v14 = vpop.xlane.xlu0 %286 }
 0x17b   : > { %296 = vst.msk [vmem:[%s174_s16 + $0x18] sm:$0xff] %vm292_vm2, %v291_v13  ;;  %294 = vst.msk [vmem:[%s174_s16 + $0x8] sm:$0xff] %vm292_vm2, %v287_v14 }
 0x17e   : > { %v289_v15 = vpop.xlane.xlu1 %288  ;;  %v285_v16 = vpop.xlane.xlu0 %284 }
 0x17f   : > { %295 = vst.msk [vmem:[%s174_s16 + $0x10] sm:$0xff] %vm292_vm2, %v289_v15  ;;  %293 = vst.msk [vmem:[%s174_s16] sm:$0xff] %vm292_vm2, %v285_v16 }
 0x182   : > { %v304_v17 = vpop.xlane.xlu1 %303  ;;  %v302_v18 = vpop.xlane.xlu0 %301 }
 0x183   : > { %311 = vst.msk [vmem:[%s174_s16 + $0x8] sm:$0xff] %vm309_vm3, %v304_v17  ;;  %310 = vst.msk [vmem:[%s174_s16] sm:$0xff] %vm309_vm3, %v302_v18 }
 0x186   : > { %v308_v19 = vpop.xlane.xlu1 %307  ;;  %v306_v20 = vpop.xlane.xlu0 %305 }
 0x187   : > { %313 = vst.msk [vmem:[%s174_s16 + $0x18] sm:$0xff] %vm309_vm3, %v308_v19  ;;  %312 = vst.msk [vmem:[%s174_s16 + $0x10] sm:$0xff] %vm309_vm3, %v306_v20 }
 0x188 PF: > { %s12_s13 = sadd.s32 1, %s506_s13   ;;  %s603_s9 = smov %s498_s11 }
 0x189   : > { %p9_p8 = scmp.ge.s32.totalorder %s12_s13, 6   ;;  %s604_s10 = smov %s502_s12 }
 0x18a   : > { %s605_s11 = smov %s608_s14  ;;  %s606_s12 = smov %s612_s15 }
 0x18b   :  { %11 = sbr.rel (!%p9_p8) target bundleno = 3 (0x3), region = 58 }

// kernel: _lambda_.3
= control target key start
LH: loop header
LB: loop body
LE: loop exit
PB: predicated region body
PF: predicated region fallthrough
CT: control target
= control target key end

     0   :  { %s651_s12 = smov 0   ;;  %s653_s13 = smov 0   ;;  %s774_s0 = inlined_call_operand.vmem [shape: f32[2,4,256], index: 0, kind: input, shape index: {}]   ;;  %s775_s1 = inlined_call_operand.vmem [shape: f32[32,4], index: 1, kind: input, shape index: {}]   ;;  %s776_s2 = inlined_call_operand.vmem [shape: f32[32,2], index: 2, kind: input, shape index: {}]   ;;  %s777_s3 = inlined_call_operand.vmem [shape: f32[2,32,256], index: 3, kind: output, shape index: {}]  }
   0x1   :  { %s655_s14 = smov 0   ;;  %s657_s15 = smov 0  }
   0x2   :  { %s659_s16 = smov 0   ;;  %s661_s17 = smov 0  }
   0x3   :  { %s663_s18 = smov 0  }
   0x4 LB: > { %s22_s19 = sadd.s32 1, %s619_s16  ;;  %s25_s20 = sadd.s32 1, %s623_s17  ;;  %s627_s18 = sphi %s663_s18, %s13_s18   ;;  %s623_s17 = sphi %s661_s17, %s784_s17   ;;  %s619_s16 = sphi %s659_s16, %s783_s16   ;;  %s615_s15 = sphi %s657_s15, %s782_s15   ;;  %s611_s14 = sphi %s655_s14, %s781_s14   ;;  %s607_s13 = sphi %s653_s13, %s780_s13   ;;  %s603_s12 = sphi %s651_s12, %s779_s12  }
   0x5   : > { %p23_p0 = scmp.ge.s32.totalorder %s22_s19, 2  ;;  %s478_s21 = sadd.s32 4294967295, %s627_s18  }
   0x6   : > { %p114_p1 = scmp.ne.s32.totalorder %s607_s13, %s603_s12  ;;  %p115_p2 = scmp.eq.s32.totalorder %s478_s21, 3 }
   0x7   : > { %s786_s19 = smov (%p23_p0, %s22_s19), 0  ;;  %s788_s20 = smov (!%p23_p0, %s25_s20), %s623_s17 }
   0x8   : > { %s100_s22 = ssub.s32 %s619_s16, %s786_s19  ;;  %p27_p3 = scmp.ge.s32.totalorder %s788_s20, 2 }
   0x9   : > { %p482_p4 = scmp.ge.s32.totalorder %s627_s18, 1  ;;  %p697_p5 = por %p115_p2, %p114_p1 }
   0xa   : > { %p156_p6 = scmp.lt.s32.totalorder %s627_s18, 5  ;;  %s790_s20 = smov (%p27_p3, %s788_s20), 0 }
   0xb   : > { %s99_s24 = ssub.s32 %s623_s17, %s790_s20  ;;  %s104_s26 = sadd.s32 1, %s607_s13 }
   0xc   : > { %p157_p7 = pnand %p482_p4, %p156_p6  ;;  %s101_s25 = sor.u32 %s100_s22, %s99_s24 }
   0xd   : > { %p102_p8 = scmp.eq.s32.totalorder %s101_s25, 0  ;;  %p182_p9 = scmp.lt.s32.totalorder (!%p157_p7), %s615_s15, 1  ;;  %v190_v0 = vld [vmem:[%s775_s1] sm:$0xff] (!%p157_p7)  ;;  %vm195_vm0 = vcmask (!%p157_p7), 31744   ;;  %v192_v1 = vld [vmem:[%s775_s1 + $0x10] sm:$0xff] (!%p157_p7)  ;;  %v629_v3 = vmov (!%p157_p7), 0  }
   0xe   : > { %160 = sbr.rel (%p157_p7) target bundleno = 258 (0x102), region = 32  ;;  %p184_p10 = scmp.lt.s32.totalorder (!%p157_p7), %s611_s14, 1  ;;  %503 = vmatprep.mubr.msk.f32.mxu0 (!%p157_p7), %vm195_vm0, %v190_v0  ;;  %506 = vmatprep.mubr.msk.f32.mxu1 (!%p157_p7), %vm195_vm0, %v192_v1  ;;  %v299_v2 = vld [vmem:[%s776_s2 + $0x10] sm:$0xff] (!%p157_p7)  ;;  %v297_v4 = vld [vmem:[%s776_s2] sm:$0xff] (!%p157_p7)  ;;  %v300_v5 = vld [vmem:[%s776_s2 + $0x18] sm:$0xff] (!%p157_p7)  ;;  %vm208_vm1 = vcmask (!%p157_p7), 1043456  }
   0xf   : > { %s708_s27 = scalar_select %p102_p8, %s607_s13, %s104_s26  }
  0x10   : > { %570 = vset.pattern.permute.xlu1 (!%p157_p7), %v629_v3  ;;  %569 = vset.pattern.permute.xlu0 (!%p157_p7), %v629_v3  ;;  %v298_v6 = vld [vmem:[%s776_s2 + $0x8] sm:$0xff] (!%p157_p7)  ;;  %v193_v9 = vld [vmem:[%s775_s1 + $0x18] sm:$0xff] (!%p157_p7)  ;;  %v630_v10 = vmov (!%p157_p7), 1   ;;  %s179_s9 = sand.u32 (!%p157_p7), 1, %s603_s12  }
  0x11   : > { %313 = vperm.xlu1 (!%p157_p7), %570, %v299_v2   ;;  %303 = vperm.xlu0 (!%p157_p7), %569, %v297_v4   ;;  %v191_v8 = vld [vmem:[%s775_s1 + $0x8] sm:$0xff] (!%p157_p7) }
  0x15   : > { %s183_s7 = scalar_select %p182_p9, %s615_s15, 1  ;;  %318 = vperm.xlu1 %570, %v300_v5   ;;  %308 = vperm.xlu0 %569, %v298_v6  }
  0x16   : > { %s185_s10 = scalar_select %p184_p10, %s611_s14, 1 }
  0x17   : > { %s484_s11 = sshll.u32 %s183_s7, 1 }
  0x18   : > { %s187_s26 = sadd.s32 %s484_s11, %s185_s10  ;;  %s483_s10 = sshll.u32 %s179_s9, 5 }
  0x19   : > { %s485_s28 = sshll.u32 %s187_s26, 2  ;;  %572 = vset.pattern.permute.xlu1 %v630_v10  ;;  %571 = vset.pattern.permute.xlu0 %v630_v10  ;;  %s181_s12 = scalar_lea.vmem [#allocation2], %s483_s10 }
  0x1a   : > { %s189_s4 = scalar_lea.vmem %s774_s0, %s485_s28  ;;  %330 = vperm.xlu1 %572, %v298_v6   ;;  %326 = vperm.xlu0 %571, %v297_v4   ;;  %s492_s11 = sshll.u32 (%p697_p5), %s615_s15, 3 }
  0x1b   : > { %v194_v7 = vld [vmem:[%s189_s4] sm:$0xf]  ;;  %s361_s21 = sadd.s32 (%p697_p5), %s611_s14, %s492_s11 }
  0x1c   : > { %501 = vmatprep.subr.msk.mxu0 %vm208_vm1, %v194_v7  ;;  %509 = vmatprep.subr.msk.mxu1 %vm208_vm1, %v194_v7  ;;  %s493_s22 = sshll.u32 (%p697_p5), %s361_s21, 3 }
  0x1d   : > { %502 = vmatpush3.msk.msra.mxu0 %vm208_vm1, %v194_v7  ;;  %510 = vmatpush3.msk.msra.mxu1 %vm208_vm1, %v194_v7  ;;  %s363_s26 = scalar_lea.vmem (%p697_p5), %s777_s3, %s493_s22 }
  0x1e   : > { %504 = vmatmul.mubr.msk.f32.vlgmr.msra.gmra.mrb[0].mxu0 %vm195_vm0, %v191_v8  ;;  %507 = vmatmul.mubr.msk.f32.vlgmr.msra.gmra.mrb[0].mxu1 %vm195_vm0, %v193_v9 }
  0x1f   : > { %334 = vperm.xlu1 %572, %v299_v2   ;;  %338 = vperm.xlu0 %571, %v300_v5  }
  0x90   : > { %v304_v11 = vpop.permute.xlu0 %303  ;;  %v314_v12 = vpop.permute.xlu1 %313 }
  0x94   : > { %v309_v13 = vpop.permute.xlu0 %308  ;;  %v319_v14 = vpop.permute.xlu1 %318 }
  0x99   : > { %v327_v15 = vpop.permute.xlu0 %326  ;;  %v331_v16 = vpop.permute.xlu1 %330 }
  0x9e   : > { %v339_v23 = vpop.permute.xlu0 %338  ;;  %v335_v26 = vpop.permute.xlu1 %334 }
  0xf1   : > { %v505_v17 = vpop.f32.mrb[0].mxu0  ;;  %v508_v18 = vpop.f32.mrb[0].mxu1 }
  0xf2   : > { %v322_v19 = vmul.f32 %v505_v17, %v309_v13  ;;  %v324_v20 = vmul.f32 %v508_v18, %v319_v14  ;;  %v278_v21 = vpop.f32.mrb[1].mxu0  ;;  %v288_v22 = vpop.f32.mrb[1].mxu1 }
  0xf3   : > { %v321_v24 = vmul.f32 %v304_v11, %v278_v21  ;;  %v323_v25 = vmul.f32 %v314_v12, %v288_v22  ;;  %359 = sbr.rel (!%p697_p5) target bundleno = 258 (0x102), region = 36 }
  0xf4   : > { %v342_v27 = vadd.f32 %v331_v16, %v322_v19  ;;  %v344_v28 = vadd.f32 %v339_v23, %v324_v20 }
  0xf5   : > { %v341_v29 = vadd.f32 %v327_v15, %v321_v24  ;;  %v343_v30 = vadd.f32 %v335_v26, %v323_v25 }
  0xf6   : > { %v346_v31 = vmax.f32 %v342_v27, 0.0  ;;  %v348_v32 = vmax.f32 %v344_v28, 0.0 }
  0xf7   : > { %v345_v33 = vmax.f32 %v341_v29, 0.0  ;;  %v347_v34 = vmax.f32 %v343_v30, 0.0 }
  0xf8   : > { %350 = vst [vmem:[%s181_s12 + $0x8] sm:$0xff] %v346_v31  ;;  %352 = vst [vmem:[%s181_s12 + $0x18] sm:$0xff] %v348_v32 }
  0xf9   : > { %349 = vst [vmem:[%s181_s12] sm:$0xff] %v345_v33  ;;  %351 = vst [vmem:[%s181_s12 + $0x10] sm:$0xff] %v347_v34 }
  0xff   : > { %v399_v36 = vld [vmem:[%s181_s12 + $0x8] sm:$0xff]  ;;  %v403_v38 = vld [vmem:[%s181_s12 + $0x18] sm:$0xff] }
 0x100   : > { %v397_v35 = vld [vmem:[%s181_s12] sm:$0xff]  ;;  %v401_v37 = vld [vmem:[%s181_s12 + $0x10] sm:$0xff]  ;;  %400 = vst [vmem:[%s363_s26 + $0x10] sm:$0xff] %v399_v36  ;;  %404 = vst [vmem:[%s363_s26 + $0x30] sm:$0xff] %v403_v38 }
 0x101   : > { %398 = vst [vmem:[%s363_s26] sm:$0xff] %v397_v35  ;;  %402 = vst [vmem:[%s363_s26 + $0x20] sm:$0xff] %v401_v37 }
 0x102 PF: > { %s13_s18 = sadd.s32 1, %s627_s18   ;;  %s779_s12 = smov %s607_s13 }
 0x103   : > { %p10_p11 = scmp.ge.s32.totalorder %s13_s18, 6   ;;  %s780_s13 = smov %s708_s27 }
 0x104   : > { %s781_s14 = smov %s619_s16  ;;  %s782_s15 = smov %s623_s17 }
 0x105   : > { %s783_s16 = smov %s786_s19  ;;  %s784_s17 = smov %s790_s20 }
 0x106   :  { %12 = sbr.rel (!%p10_p11) target bundleno = 4 (0x4), region = 100 }

</bundles_post_ra>
